<compile_context>
chip_gen: v7x
topology: tpu7x:2x2x1
jax: 0.10.0
libtpu: 0.0.40
codegen_flags: <defaults>
</compile_context>

<pallas_src>
import jax
import jax.numpy as jnp
from jax.experimental import pallas as pl
from jax.experimental.pallas import tpu as pltpu

HIDDEN = 10
LANES = 128


def mlp_kernel(params_ref, x_ref, o_ref):
    # params_ref: (31,) f32 in SMEM  -- [w1(10) | b1(10) | w2(10) | b2(1)]
    # x_ref     : (block_rows, 128) f32 in VMEM -- batch dense on sublanes+lanes
    # o_ref     : (block_rows, 128) f32 in VMEM
    x = x_ref[...]

    # Output-layer bias as the accumulator seed.
    acc = jnp.full_like(x, params_ref[3 * HIDDEN])

    # Unrolled hidden units: scalar-broadcast FMA (VPU) + tanh (EUP) + FMA (VPU).
    for j in range(HIDDEN):
        pre = params_ref[j] * x + params_ref[HIDDEN + j]          # Linear(1,10) row j
        h = 0.5 * (jnp.tanh(0.5 * pre) + 1.0)                     # sigmoid, EUP, overflow-safe
        acc = acc + params_ref[2 * HIDDEN + j] * h                # Linear(10,1) accumulate

    o_ref[...] = acc


@jax.jit
def network_forward(x, w1, b1, w2, b2):
    """Pallas TPU forward of Network.

    x : (N, 1)  float32   (PyTorch layout)
    w1: (10, 1) float32   hidden_layer.weight
    b1: (10,)   float32   hidden_layer.bias
    w2: (1, 10) float32   output_layer.weight
    b2: (1,)    float32   output_layer.bias
    returns (N, 1) float32
    """
    n = x.shape[0]

    # Batch tile: up to 512 sublanes per grid step (256 KiB block), grid grows
    # with N and is marked "parallel" so v7x's two TensorCores both run.
    block_rows = min(512, 8 * pl.cdiv(n, 8 * LANES))
    block_elems = block_rows * LANES
    n_pad = pl.cdiv(n, block_elems) * block_elems
    rows = n_pad // LANES
    grid = (rows // block_rows,)

    # Layout plumbing (trace-time, fused under jit): batch -> (sublane, lane).
    x_2d = jnp.pad(x[:, 0], (0, n_pad - n)).reshape(rows, LANES)

    # Pack all 31 parameter scalars into one SMEM vector (single tiny DMA).
    params = jnp.concatenate(
        [w1.reshape(HIDDEN), b1.reshape(HIDDEN), w2.reshape(HIDDEN), b2.reshape(1)]
    ).astype(jnp.float32)

    out_2d = pl.pallas_call(
        mlp_kernel,
        out_shape=jax.ShapeDtypeStruct((rows, LANES), jnp.float32),
        grid=grid,
        in_specs=[
            pl.BlockSpec(memory_space=pltpu.MemorySpace.SMEM),            # params (31,)
            pl.BlockSpec((block_rows, LANES), lambda i: (i, 0)),          # x tile
        ],
        out_specs=pl.BlockSpec((block_rows, LANES), lambda i: (i, 0)),    # out tile
        compiler_params=pltpu.CompilerParams(
            dimension_semantics=("parallel",),
        ),
    )(params, x_2d)

    return out_2d.reshape(n_pad)[:n][:, None]


def init_params(key):
    """Match PyTorch nn.Linear default init (U[-1/sqrt(fan_in), +1/sqrt(fan_in)])."""
    k1, k2, k3, k4 = jax.random.split(key, 4)
    bound1 = 1.0 / jnp.sqrt(1.0)   # fan_in = 1
    bound2 = 1.0 / jnp.sqrt(10.0)  # fan_in = 10
    w1 = jax.random.uniform(k1, (HIDDEN, 1), jnp.float32, -bound1, bound1)
    b1 = jax.random.uniform(k2, (HIDDEN,), jnp.float32, -bound1, bound1)
    w2 = jax.random.uniform(k3, (1, HIDDEN), jnp.float32, -bound2, bound2)
    b2 = jax.random.uniform(k4, (1,), jnp.float32, -bound2, bound2)
    return w1, b1, w2, b2


def reference_forward(x, w1, b1, w2, b2):
    h = jax.nn.sigmoid(x @ w1.T + b1)
    return h @ w2.T + b2


if __name__ == "__main__":
    key = jax.random.PRNGKey(0)
    # Same input as the original script: x = torch.linspace(0, 1, 100)[:, None]
    x = jnp.linspace(0.0, 1.0, 100, dtype=jnp.float32)[:, None]

    w1, b1, w2, b2 = init_params(key)

    out = network_forward(x, w1, b1, w2, b2)
    out = jax.block_until_ready(out)

    ref = reference_forward(x, w1, b1, w2, b2)
    assert out.shape == (100, 1)
    assert jnp.allclose(out, ref, atol=1e-4, rtol=1e-4)

    print("KERNEL_OK")
</pallas_src>

<mosaic_0001>
module attributes {stable_mosaic.version = 11 : i64} {
  func.func @mlp_kernel(%arg0: i32, %arg1: memref<31xf32, #tpu.memory_space<smem>>, %arg2: memref<8x128xf32, #tpu.memory_space<vmem>>, %arg3: memref<8x128xf32, #tpu.memory_space<vmem>>) attributes {dimension_semantics = [#tpu.dimension_semantics<parallel>], iteration_bounds = array<i64: 1>, scalar_prefetch = 0 : i64, scratch_operands = 0 : i64, tpu.core_type = #tpu.core_type<tc>, window_params = [{transform_indices = @transform_0, window_bounds = array<i64: 31>}, {transform_indices = @transform_1, window_bounds = array<i64: 8, 128>}, {transform_indices = @transform_2, window_bounds = array<i64: 8, 128>}]} {
    %c0 = arith.constant 0 : index
    %c0_0 = arith.constant 0 : index
    %0 = vector.load %arg2[%c0, %c0_0] : memref<8x128xf32, #tpu.memory_space<vmem>>, vector<8x128xf32>
    %c30 = arith.constant 30 : index
    %1 = memref.load %arg1[%c30] : memref<31xf32, #tpu.memory_space<smem>>
    %2 = vector.broadcast %1 : f32 to vector<8x128xf32>
    %c0_1 = arith.constant 0 : index
    %3 = memref.load %arg1[%c0_1] : memref<31xf32, #tpu.memory_space<smem>>
    %4 = vector.broadcast %3 : f32 to vector<8x128xf32>
    %5 = arith.mulf %4, %0 : vector<8x128xf32>
    %c10 = arith.constant 10 : index
    %6 = memref.load %arg1[%c10] : memref<31xf32, #tpu.memory_space<smem>>
    %7 = vector.broadcast %6 : f32 to vector<8x128xf32>
    %8 = arith.addf %5, %7 : vector<8x128xf32>
    %cst = arith.constant 5.000000e-01 : f32
    %9 = vector.broadcast %cst : f32 to vector<8x128xf32>
    %10 = arith.mulf %9, %8 : vector<8x128xf32>
    %11 = math.tanh %10 : vector<8x128xf32>
    %cst_2 = arith.constant 1.000000e+00 : f32
    %12 = vector.broadcast %cst_2 : f32 to vector<8x128xf32>
    %13 = arith.addf %11, %12 : vector<8x128xf32>
    %cst_3 = arith.constant 5.000000e-01 : f32
    %14 = vector.broadcast %cst_3 : f32 to vector<8x128xf32>
    %15 = arith.mulf %14, %13 : vector<8x128xf32>
    %c20 = arith.constant 20 : index
    %16 = memref.load %arg1[%c20] : memref<31xf32, #tpu.memory_space<smem>>
    %17 = vector.broadcast %16 : f32 to vector<8x128xf32>
    %18 = arith.mulf %17, %15 : vector<8x128xf32>
    %19 = arith.addf %2, %18 : vector<8x128xf32>
    %c1 = arith.constant 1 : index
    %20 = memref.load %arg1[%c1] : memref<31xf32, #tpu.memory_space<smem>>
    %21 = vector.broadcast %20 : f32 to vector<8x128xf32>
    %22 = arith.mulf %21, %0 : vector<8x128xf32>
    %c11 = arith.constant 11 : index
    %23 = memref.load %arg1[%c11] : memref<31xf32, #tpu.memory_space<smem>>
    %24 = vector.broadcast %23 : f32 to vector<8x128xf32>
    %25 = arith.addf %22, %24 : vector<8x128xf32>
    %cst_4 = arith.constant 5.000000e-01 : f32
    %26 = vector.broadcast %cst_4 : f32 to vector<8x128xf32>
    %27 = arith.mulf %26, %25 : vector<8x128xf32>
    %28 = math.tanh %27 : vector<8x128xf32>
    %cst_5 = arith.constant 1.000000e+00 : f32
    %29 = vector.broadcast %cst_5 : f32 to vector<8x128xf32>
    %30 = arith.addf %28, %29 : vector<8x128xf32>
    %cst_6 = arith.constant 5.000000e-01 : f32
    %31 = vector.broadcast %cst_6 : f32 to vector<8x128xf32>
    %32 = arith.mulf %31, %30 : vector<8x128xf32>
    %c21 = arith.constant 21 : index
    %33 = memref.load %arg1[%c21] : memref<31xf32, #tpu.memory_space<smem>>
    %34 = vector.broadcast %33 : f32 to vector<8x128xf32>
    %35 = arith.mulf %34, %32 : vector<8x128xf32>
    %36 = arith.addf %19, %35 : vector<8x128xf32>
    %c2 = arith.constant 2 : index
    %37 = memref.load %arg1[%c2] : memref<31xf32, #tpu.memory_space<smem>>
    %38 = vector.broadcast %37 : f32 to vector<8x128xf32>
    %39 = arith.mulf %38, %0 : vector<8x128xf32>
    %c12 = arith.constant 12 : index
    %40 = memref.load %arg1[%c12] : memref<31xf32, #tpu.memory_space<smem>>
    %41 = vector.broadcast %40 : f32 to vector<8x128xf32>
    %42 = arith.addf %39, %41 : vector<8x128xf32>
    %cst_7 = arith.constant 5.000000e-01 : f32
    %43 = vector.broadcast %cst_7 : f32 to vector<8x128xf32>
    %44 = arith.mulf %43, %42 : vector<8x128xf32>
    %45 = math.tanh %44 : vector<8x128xf32>
    %cst_8 = arith.constant 1.000000e+00 : f32
    %46 = vector.broadcast %cst_8 : f32 to vector<8x128xf32>
    %47 = arith.addf %45, %46 : vector<8x128xf32>
    %cst_9 = arith.constant 5.000000e-01 : f32
    %48 = vector.broadcast %cst_9 : f32 to vector<8x128xf32>
    %49 = arith.mulf %48, %47 : vector<8x128xf32>
    %c22 = arith.constant 22 : index
    %50 = memref.load %arg1[%c22] : memref<31xf32, #tpu.memory_space<smem>>
    %51 = vector.broadcast %50 : f32 to vector<8x128xf32>
    %52 = arith.mulf %51, %49 : vector<8x128xf32>
    %53 = arith.addf %36, %52 : vector<8x128xf32>
    %c3 = arith.constant 3 : index
    %54 = memref.load %arg1[%c3] : memref<31xf32, #tpu.memory_space<smem>>
    %55 = vector.broadcast %54 : f32 to vector<8x128xf32>
    %56 = arith.mulf %55, %0 : vector<8x128xf32>
    %c13 = arith.constant 13 : index
    %57 = memref.load %arg1[%c13] : memref<31xf32, #tpu.memory_space<smem>>
    %58 = vector.broadcast %57 : f32 to vector<8x128xf32>
    %59 = arith.addf %56, %58 : vector<8x128xf32>
    %cst_10 = arith.constant 5.000000e-01 : f32
    %60 = vector.broadcast %cst_10 : f32 to vector<8x128xf32>
    %61 = arith.mulf %60, %59 : vector<8x128xf32>
    %62 = math.tanh %61 : vector<8x128xf32>
    %cst_11 = arith.constant 1.000000e+00 : f32
    %63 = vector.broadcast %cst_11 : f32 to vector<8x128xf32>
    %64 = arith.addf %62, %63 : vector<8x128xf32>
    %cst_12 = arith.constant 5.000000e-01 : f32
    %65 = vector.broadcast %cst_12 : f32 to vector<8x128xf32>
    %66 = arith.mulf %65, %64 : vector<8x128xf32>
    %c23 = arith.constant 23 : index
    %67 = memref.load %arg1[%c23] : memref<31xf32, #tpu.memory_space<smem>>
    %68 = vector.broadcast %67 : f32 to vector<8x128xf32>
    %69 = arith.mulf %68, %66 : vector<8x128xf32>
    %70 = arith.addf %53, %69 : vector<8x128xf32>
    %c4 = arith.constant 4 : index
    %71 = memref.load %arg1[%c4] : memref<31xf32, #tpu.memory_space<smem>>
    %72 = vector.broadcast %71 : f32 to vector<8x128xf32>
    %73 = arith.mulf %72, %0 : vector<8x128xf32>
    %c14 = arith.constant 14 : index
    %74 = memref.load %arg1[%c14] : memref<31xf32, #tpu.memory_space<smem>>
    %75 = vector.broadcast %74 : f32 to vector<8x128xf32>
    %76 = arith.addf %73, %75 : vector<8x128xf32>
    %cst_13 = arith.constant 5.000000e-01 : f32
    %77 = vector.broadcast %cst_13 : f32 to vector<8x128xf32>
    %78 = arith.mulf %77, %76 : vector<8x128xf32>
    %79 = math.tanh %78 : vector<8x128xf32>
    %cst_14 = arith.constant 1.000000e+00 : f32
    %80 = vector.broadcast %cst_14 : f32 to vector<8x128xf32>
    %81 = arith.addf %79, %80 : vector<8x128xf32>
    %cst_15 = arith.constant 5.000000e-01 : f32
    %82 = vector.broadcast %cst_15 : f32 to vector<8x128xf32>
    %83 = arith.mulf %82, %81 : vector<8x128xf32>
    %c24 = arith.constant 24 : index
    %84 = memref.load %arg1[%c24] : memref<31xf32, #tpu.memory_space<smem>>
    %85 = vector.broadcast %84 : f32 to vector<8x128xf32>
    %86 = arith.mulf %85, %83 : vector<8x128xf32>
    %87 = arith.addf %70, %86 : vector<8x128xf32>
    %c5 = arith.constant 5 : index
    %88 = memref.load %arg1[%c5] : memref<31xf32, #tpu.memory_space<smem>>
    %89 = vector.broadcast %88 : f32 to vector<8x128xf32>
    %90 = arith.mulf %89, %0 : vector<8x128xf32>
    %c15 = arith.constant 15 : index
    %91 = memref.load %arg1[%c15] : memref<31xf32, #tpu.memory_space<smem>>
    %92 = vector.broadcast %91 : f32 to vector<8x128xf32>
    %93 = arith.addf %90, %92 : vector<8x128xf32>
    %cst_16 = arith.constant 5.000000e-01 : f32
    %94 = vector.broadcast %cst_16 : f32 to vector<8x128xf32>
    %95 = arith.mulf %94, %93 : vector<8x128xf32>
    %96 = math.tanh %95 : vector<8x128xf32>
    %cst_17 = arith.constant 1.000000e+00 : f32
    %97 = vector.broadcast %cst_17 : f32 to vector<8x128xf32>
    %98 = arith.addf %96, %97 : vector<8x128xf32>
    %cst_18 = arith.constant 5.000000e-01 : f32
    %99 = vector.broadcast %cst_18 : f32 to vector<8x128xf32>
    %100 = arith.mulf %99, %98 : vector<8x128xf32>
    %c25 = arith.constant 25 : index
    %101 = memref.load %arg1[%c25] : memref<31xf32, #tpu.memory_space<smem>>
    %102 = vector.broadcast %101 : f32 to vector<8x128xf32>
    %103 = arith.mulf %102, %100 : vector<8x128xf32>
    %104 = arith.addf %87, %103 : vector<8x128xf32>
    %c6 = arith.constant 6 : index
    %105 = memref.load %arg1[%c6] : memref<31xf32, #tpu.memory_space<smem>>
    %106 = vector.broadcast %105 : f32 to vector<8x128xf32>
    %107 = arith.mulf %106, %0 : vector<8x128xf32>
    %c16 = arith.constant 16 : index
    %108 = memref.load %arg1[%c16] : memref<31xf32, #tpu.memory_space<smem>>
    %109 = vector.broadcast %108 : f32 to vector<8x128xf32>
    %110 = arith.addf %107, %109 : vector<8x128xf32>
    %cst_19 = arith.constant 5.000000e-01 : f32
    %111 = vector.broadcast %cst_19 : f32 to vector<8x128xf32>
    %112 = arith.mulf %111, %110 : vector<8x128xf32>
    %113 = math.tanh %112 : vector<8x128xf32>
    %cst_20 = arith.constant 1.000000e+00 : f32
    %114 = vector.broadcast %cst_20 : f32 to vector<8x128xf32>
    %115 = arith.addf %113, %114 : vector<8x128xf32>
    %cst_21 = arith.constant 5.000000e-01 : f32
    %116 = vector.broadcast %cst_21 : f32 to vector<8x128xf32>
    %117 = arith.mulf %116, %115 : vector<8x128xf32>
    %c26 = arith.constant 26 : index
    %118 = memref.load %arg1[%c26] : memref<31xf32, #tpu.memory_space<smem>>
    %119 = vector.broadcast %118 : f32 to vector<8x128xf32>
    %120 = arith.mulf %119, %117 : vector<8x128xf32>
    %121 = arith.addf %104, %120 : vector<8x128xf32>
    %c7 = arith.constant 7 : index
    %122 = memref.load %arg1[%c7] : memref<31xf32, #tpu.memory_space<smem>>
    %123 = vector.broadcast %122 : f32 to vector<8x128xf32>
    %124 = arith.mulf %123, %0 : vector<8x128xf32>
    %c17 = arith.constant 17 : index
    %125 = memref.load %arg1[%c17] : memref<31xf32, #tpu.memory_space<smem>>
    %126 = vector.broadcast %125 : f32 to vector<8x128xf32>
    %127 = arith.addf %124, %126 : vector<8x128xf32>
    %cst_22 = arith.constant 5.000000e-01 : f32
    %128 = vector.broadcast %cst_22 : f32 to vector<8x128xf32>
    %129 = arith.mulf %128, %127 : vector<8x128xf32>
    %130 = math.tanh %129 : vector<8x128xf32>
    %cst_23 = arith.constant 1.000000e+00 : f32
    %131 = vector.broadcast %cst_23 : f32 to vector<8x128xf32>
    %132 = arith.addf %130, %131 : vector<8x128xf32>
    %cst_24 = arith.constant 5.000000e-01 : f32
    %133 = vector.broadcast %cst_24 : f32 to vector<8x128xf32>
    %134 = arith.mulf %133, %132 : vector<8x128xf32>
    %c27 = arith.constant 27 : index
    %135 = memref.load %arg1[%c27] : memref<31xf32, #tpu.memory_space<smem>>
    %136 = vector.broadcast %135 : f32 to vector<8x128xf32>
    %137 = arith.mulf %136, %134 : vector<8x128xf32>
    %138 = arith.addf %121, %137 : vector<8x128xf32>
    %c8 = arith.constant 8 : index
    %139 = memref.load %arg1[%c8] : memref<31xf32, #tpu.memory_space<smem>>
    %140 = vector.broadcast %139 : f32 to vector<8x128xf32>
    %141 = arith.mulf %140, %0 : vector<8x128xf32>
    %c18 = arith.constant 18 : index
    %142 = memref.load %arg1[%c18] : memref<31xf32, #tpu.memory_space<smem>>
    %143 = vector.broadcast %142 : f32 to vector<8x128xf32>
    %144 = arith.addf %141, %143 : vector<8x128xf32>
    %cst_25 = arith.constant 5.000000e-01 : f32
    %145 = vector.broadcast %cst_25 : f32 to vector<8x128xf32>
    %146 = arith.mulf %145, %144 : vector<8x128xf32>
    %147 = math.tanh %146 : vector<8x128xf32>
    %cst_26 = arith.constant 1.000000e+00 : f32
    %148 = vector.broadcast %cst_26 : f32 to vector<8x128xf32>
    %149 = arith.addf %147, %148 : vector<8x128xf32>
    %cst_27 = arith.constant 5.000000e-01 : f32
    %150 = vector.broadcast %cst_27 : f32 to vector<8x128xf32>
    %151 = arith.mulf %150, %149 : vector<8x128xf32>
    %c28 = arith.constant 28 : index
    %152 = memref.load %arg1[%c28] : memref<31xf32, #tpu.memory_space<smem>>
    %153 = vector.broadcast %152 : f32 to vector<8x128xf32>
    %154 = arith.mulf %153, %151 : vector<8x128xf32>
    %155 = arith.addf %138, %154 : vector<8x128xf32>
    %c9 = arith.constant 9 : index
    %156 = memref.load %arg1[%c9] : memref<31xf32, #tpu.memory_space<smem>>
    %157 = vector.broadcast %156 : f32 to vector<8x128xf32>
    %158 = arith.mulf %157, %0 : vector<8x128xf32>
    %c19 = arith.constant 19 : index
    %159 = memref.load %arg1[%c19] : memref<31xf32, #tpu.memory_space<smem>>
    %160 = vector.broadcast %159 : f32 to vector<8x128xf32>
    %161 = arith.addf %158, %160 : vector<8x128xf32>
    %cst_28 = arith.constant 5.000000e-01 : f32
    %162 = vector.broadcast %cst_28 : f32 to vector<8x128xf32>
    %163 = arith.mulf %162, %161 : vector<8x128xf32>
    %164 = math.tanh %163 : vector<8x128xf32>
    %cst_29 = arith.constant 1.000000e+00 : f32
    %165 = vector.broadcast %cst_29 : f32 to vector<8x128xf32>
    %166 = arith.addf %164, %165 : vector<8x128xf32>
    %cst_30 = arith.constant 5.000000e-01 : f32
    %167 = vector.broadcast %cst_30 : f32 to vector<8x128xf32>
    %168 = arith.mulf %167, %166 : vector<8x128xf32>
    %c29 = arith.constant 29 : index
    %169 = memref.load %arg1[%c29] : memref<31xf32, #tpu.memory_space<smem>>
    %170 = vector.broadcast %169 : f32 to vector<8x128xf32>
    %171 = arith.mulf %170, %168 : vector<8x128xf32>
    %172 = arith.addf %155, %171 : vector<8x128xf32>
    %c0_31 = arith.constant 0 : index
    %c0_32 = arith.constant 0 : index
    %173 = vector.load %arg3[%c0_31, %c0_32] : memref<8x128xf32, #tpu.memory_space<vmem>>, vector<8x128xf32>
    tpu.vector_store %arg3[%c0_31, %c0_32], %172 {strides = array<i32>} : memref<8x128xf32, #tpu.memory_space<vmem>>, vector<8x128xf32>,
    return
  }
  func.func @transform_0(%arg0: i32) -> i32 {
    %c0_i32 = arith.constant 0 : i32
    %c0_i32_0 = arith.constant 0 : i32
    return %c0_i32 : i32
  }
  func.func @transform_1(%arg0: i32) -> (i32, i32) {
    %c0_i32 = arith.constant 0 : i32
    %c0_i32_0 = arith.constant 0 : i32
    return %arg0, %c0_i32 : i32, i32
  }
  func.func @transform_2(%arg0: i32) -> (i32, i32) {
    %c0_i32 = arith.constant 0 : i32
    %c0_i32_0 = arith.constant 0 : i32
    return %arg0, %c0_i32 : i32, i32
  }
}

</mosaic_0001>

<bundles_post_ra>
// kernel: network_forward.1
= control target key start
LH: loop header
LB: loop body
LE: loop exit
PB: predicated region body
PF: predicated region fallthrough
CT: control target
= control target key end

     0   :  { %7 = vsyncpa [#allocation3], 0  ;;  %s341_s0 = inlined_call_operand.vmem [shape: f32[31], index: 0, kind: input, shape index: {}]   ;;  %s342_s1 = inlined_call_operand.vmem [shape: f32[8,128], index: 1, kind: input, shape index: {}]   ;;  %s343_s2 = inlined_call_operand.vmem [shape: f32[8,128], index: 2, kind: output, shape index: {}]  }
   0x1   :  { %s14_s11 = sshll.u32 %s341_s0, 4  ;;  %s15_s11 = int_to_ptr.vmem [resolvable:$true] %s14_s11 }
   0x2   :  { %s224_s12 = scalar_lea.vmem %s15_s11, 16  ;;  %p229_p1 = scmp.lt.s32.totalorder %s15_s11, %s15_s11 }
   0x3   :  { %p225_p0 = scmp.ne.s32.totalorder %s15_s11, %s224_s12  ;;  %p230_p2 = scmp.lt.s32.totalorder %s224_s12, %s224_s12 }
   0x5   :  { %p231_p3 = por %p230_p2, %p229_p1 }
   0x7   :  { %p232_p4 = pnand %p231_p3, %p225_p0 }
   0x9   :  { %235 = shalt.err (!%p232_p4)
}
   0xa   :  { %s238_s13 = smov [#allocation2]  }
   0xb   :  { %17 = dma.vmem_to_smem %s15_s11, 16, %s238_s13, [#allocation3]  }
   0xc   :  { %236 = dma.done.wait [#allocation3], 16  }
   0xd   :  { %237 = vsyncadd [#allocation3], 4294967280 }
   0xe   :  { %23 = sfence }
   0xf   :  { %s27_s14 = sld [smem:[#allocation2]]  ;;  %s174_s15 = sld [smem:[#allocation2 + $0xa]]  ;;  %v260_v0 = vld [vmem:[%s342_s1] sm:$0xff] }
  0x10   :  { %s176_s16 = sld [smem:[#allocation2 + $0x1]]  ;;  %s177_s17 = sld [smem:[#allocation2 + $0xb]] }
  0x11   :  { %s179_s18 = sld [smem:[#allocation2 + $0x2]]  ;;  %s180_s20 = sld [smem:[#allocation2 + $0xc]] }
  0x12   :  { %s182_s21 = sld [smem:[#allocation2 + $0x3]]  ;;  %s262_s22 = sld [smem:[#allocation2 + $0xd]] }
  0x13   :  { %s185_s23 = sld [smem:[#allocation2 + $0x4]]  ;;  %s265_s24 = sld [smem:[#allocation2 + $0xe]] }
  0x14   :  { %s267_s25 = sld [smem:[#allocation2 + $0x5]]  ;;  %s269_s26 = sld [smem:[#allocation2 + $0xf]] }
  0x15   :  { %v28_v1 = vstv %s27_s14  ;;  %v31_v3 = vstv %s174_s15  ;;  %s272_s1 = sld [smem:[#allocation2 + $0x6]]  ;;  %s275_s27 = sld [smem:[#allocation2 + $0x10]] }
  0x16   :  { %v29_v2 = vmul.f32 %v28_v1, %v260_v0  ;;  %v42_v4 = vstv %s176_s16  ;;  %v45_v5 = vstv %s177_s17  ;;  %s278_s28 = sld [smem:[#allocation2 + $0x7]]  ;;  %s280_s29 = sld [smem:[#allocation2 + $0x11]] }
  0x17   :  { %v43_v7 = vmul.f32 %v42_v4, %v260_v0  ;;  %v56_v8 = vstv %s179_s18  ;;  %v59_v10 = vstv %s180_s20  ;;  %s283_s30 = sld [smem:[#allocation2 + $0x8]]  ;;  %s287_s3 = sld [smem:[#allocation2 + $0x12]] }
  0x18   :  { %v32_v6 = vadd.f32 %v31_v3, %v29_v2  ;;  %v57_v9 = vmul.f32 %v56_v8, %v260_v0  ;;  %v70_v13 = vstv %s182_s21  ;;  %v73_v14 = vstv %s262_s22  ;;  %s290_s4 = sld [smem:[#allocation2 + $0x9]]  ;;  %s292_s5 = sld [smem:[#allocation2 + $0x13]] }
  0x19   :  { %v46_v12 = vadd.f32 %v45_v5, %v43_v7  ;;  %v71_v16 = vmul.f32 %v70_v13, %v260_v0  ;;  %v84_v17 = vstv %s185_s23  ;;  %v87_v20 = vstv %s265_s24  ;;  %s297_s6 = sld [smem:[#allocation2 + $0x14]]  ;;  %s301_s7 = sld [smem:[#allocation2 + $0x1e]] }
  0x1a   :  { %v33_v11 = vmul.f32 0.5, %v32_v6  ;;  %v60_v15 = vadd.f32 %v59_v10, %v57_v9  ;;  %v85_v19 = vmul.f32 %v84_v17, %v260_v0  ;;  %v98_v23 = vstv %s267_s25  ;;  %s305_s8 = sld [smem:[#allocation2 + $0x15]]  ;;  %s308_s9 = sld [smem:[#allocation2 + $0x16]] }
  0x1b   :  { %v47_v18 = vmul.f32 0.5, %v46_v12  ;;  %v74_v22 = vadd.f32 %v73_v14, %v71_v16  ;;  %v99_v25 = vmul.f32 %v98_v23, %v260_v0  ;;  %v101_v26 = vstv %s269_s26  ;;  %s313_s10 = sld [smem:[#allocation2 + $0x17]]  ;;  %s317_s11 = sld [smem:[#allocation2 + $0x18]] }
  0x1c   :  { %204 = vtanh.f32 %v33_v11  ;;  %v61_v21 = vmul.f32 0.5, %v60_v15  ;;  %v88_v24 = vadd.f32 %v87_v20, %v85_v19  ;;  %v112_v28 = vstv %s272_s1  ;;  %s321_s12 = sld [smem:[#allocation2 + $0x19]]  ;;  %s325_s13 = sld [smem:[#allocation2 + $0x1a]] }
  0x1d   :  { %206 = vtanh.f32 %v47_v18  ;;  %v75_v27 = vmul.f32 0.5, %v74_v22  ;;  %v102_v30 = vadd.f32 %v101_v26, %v99_v25  ;;  %v113_v31 = vmul.f32 %v112_v28, %v260_v0  ;;  %s328_s14 = sld [smem:[#allocation2 + $0x1b]]  ;;  %s332_s15 = sld [smem:[#allocation2 + $0x1c]] }
  0x1e   :  { %208 = vtanh.f32 %v61_v21  ;;  %v89_v29 = vmul.f32 0.5, %v88_v24  ;;  %v115_v32 = vstv %s275_s27  ;;  %v126_v33 = vstv %s278_s28  ;;  %s202_s16 = sld [smem:[#allocation2 + $0x1d]] }
  0x1f   :  { %210 = vtanh.f32 %v75_v27  ;;  %v129_v34 = vstv %s280_s29  ;;  %v103_v35 = vmul.f32 0.5, %v102_v30  ;;  %v116_v36 = vadd.f32 %v115_v32, %v113_v31 }
  0x20   :  { %212 = vtanh.f32 %v89_v29  ;;  %v127_v37 = vmul.f32 %v126_v33, %v260_v0  ;;  %v140_v38 = vstv %s283_s30  ;;  %v143_v39 = vstv %s287_s3 }
  0x21   :  { %214 = vtanh.f32 %v103_v35  ;;  %v117_v40 = vmul.f32 0.5, %v116_v36  ;;  %v141_v42 = vmul.f32 %v140_v38, %v260_v0  ;;  %v154_v43 = vstv %s290_s4 }
  0x22   :  { %v130_v41 = vadd.f32 %v129_v34, %v127_v37  ;;  %v157_v44 = vstv %s292_s5  ;;  %v155_v48 = vmul.f32 %v154_v43, %v260_v0  ;;  %v38_v51 = vstv %s297_s6 }
  0x23   :  { %216 = vtanh.f32 %v117_v40  ;;  %v144_v47 = vadd.f32 %v143_v39, %v141_v42  ;;  %v26_v55 = vstv %s301_s7  ;;  %v52_v58 = vstv %s305_s8 }
  0x24   :  { %v131_v46 = vmul.f32 0.5, %v130_v41  ;;  %v158_v53 = vadd.f32 %v157_v44, %v155_v48  ;;  %v66_v0 = vstv %s308_s9  ;;  %v80_v6 = vstv %s313_s10 }
  0x25   :  { %v145_v52 = vmul.f32 0.5, %v144_v47  ;;  %v94_v11 = vstv %s317_s11  ;;  %v108_v17 = vstv %s321_s12  ;;  %v122_v23 = vstv %s325_s13 }
  0x26   :  { %v205_v45 = vpop.eup %204  ;;  %218 = vtanh.f32 %v131_v46  ;;  %v159_v60 = vmul.f32 0.5, %v158_v53  ;;  %v136_v29 = vstv %s328_s14  ;;  %v150_v35 = vstv %s332_s15 }
  0x27   :  { %v35_v49 = vadd.f32 1.0, %v205_v45  ;;  %v207_v50 = vpop.eup %206  ;;  %220 = vtanh.f32 %v145_v52  ;;  %v164_v40 = vstv %s202_s16 }
  0x28   :  { %v209_v54 = vpop.eup %208  ;;  %v49_v57 = vadd.f32 1.0, %v207_v50  ;;  %222 = vtanh.f32 %v159_v60 }
  0x29   :  { %v36_v56 = vmul.f32 0.5, %v35_v49  ;;  %v63_v59 = vadd.f32 1.0, %v209_v54  ;;  %v211_v61 = vpop.eup %210 }
  0x2a   :  { %v50_v63 = vmul.f32 0.5, %v49_v57  ;;  %v213_v1 = vpop.eup %212  ;;  %v77_v3 = vadd.f32 1.0, %v211_v61 }
  0x2b   :  { %v39_v62 = vmul.f32 %v38_v51, %v36_v56  ;;  %v64_v2 = vmul.f32 0.5, %v63_v59  ;;  %v91_v7 = vadd.f32 1.0, %v213_v1  ;;  %v215_v8 = vpop.eup %214 }
  0x2c   :  { %v53_v5 = vmul.f32 %v52_v58, %v50_v63  ;;  %v78_v10 = vmul.f32 0.5, %v77_v3  ;;  %v105_v14 = vadd.f32 1.0, %v215_v8 }
  0x2d   :  { %v40_v4 = vadd.f32 %v39_v62, %v26_v55  ;;  %v67_v9 = vmul.f32 %v66_v0, %v64_v2  ;;  %v92_v13 = vmul.f32 0.5, %v91_v7  ;;  %v217_v15 = vpop.eup %216 }
  0x2e   :  { %v81_v16 = vmul.f32 %v80_v6, %v78_v10  ;;  %v106_v20 = vmul.f32 0.5, %v105_v14  ;;  %v119_v21 = vadd.f32 1.0, %v217_v15 }
  0x2f   :  { %v54_v12 = vadd.f32 %v53_v5, %v40_v4  ;;  %v95_v19 = vmul.f32 %v94_v11, %v92_v13 }
  0x30   :  { %v219_v22 = vpop.eup %218  ;;  %v109_v25 = vmul.f32 %v108_v17, %v106_v20  ;;  %v120_v26 = vmul.f32 0.5, %v119_v21 }
  0x31   :  { %v68_v18 = vadd.f32 %v67_v9, %v54_v12  ;;  %v133_v27 = vadd.f32 1.0, %v219_v22  ;;  %v221_v28 = vpop.eup %220 }
  0x32   :  { %v123_v31 = vmul.f32 %v122_v23, %v120_v26  ;;  %v147_v33 = vadd.f32 1.0, %v221_v28  ;;  %v223_v34 = vpop.eup %222 }
  0x33   :  { %v82_v24 = vadd.f32 %v81_v16, %v68_v18  ;;  %v134_v32 = vmul.f32 0.5, %v133_v27  ;;  %v161_v39 = vadd.f32 1.0, %v223_v34 }
  0x34   :  { %v148_v38 = vmul.f32 0.5, %v147_v33 }
  0x35   :  { %v96_v30 = vadd.f32 %v95_v19, %v82_v24  ;;  %v137_v37 = vmul.f32 %v136_v29, %v134_v32  ;;  %v162_v43 = vmul.f32 0.5, %v161_v39 }
  0x36   :  { %v151_v42 = vmul.f32 %v150_v35, %v148_v38 }
  0x37   :  { %v110_v36 = vadd.f32 %v109_v25, %v96_v30  ;;  %v165_v45 = vmul.f32 %v164_v40, %v162_v43 }
  0x39   :  { %v124_v41 = vadd.f32 %v123_v31, %v110_v36 }
  0x3b   :  { %v138_v44 = vadd.f32 %v137_v37, %v124_v41 }
  0x3d   :  { %v152_v46 = vadd.f32 %v151_v42, %v138_v44 }
  0x3f   :  { %v166_v47 = vadd.f32 %v165_v45, %v152_v46 }
  0x41   :  { %167 = vst [vmem:[%s343_s2] sm:$0xff] %v166_v47 }
  0x42   :  { %172 = vsyncpa [#allocation3], 1 }

</bundles_post_ra>
